<compile_context>
chip_gen: v7x
topology: tpu7x:2x2x1
jax: 0.10.0
libtpu: 0.0.40
codegen_flags: <defaults>
</compile_context>

<pallas_src>
import functools

import jax
import jax.numpy as jnp
import numpy as np
from jax.experimental import pallas as pl
from jax.experimental.pallas import tpu as pltpu


def _round_up(x, m):
    return (x + m - 1) // m * m


def _cdiv(a, b):
    return -(-a // b)


def _choose_k(B, C):
    """How many original rows to pack side-by-side along the 128-lane axis.

    Preference order: (a) k divides B (packed view is a free reshape, no pred copy),
    (b) k*C is a multiple of 128 (dense lanes, unmasked vld/vst), (c) highest lane
    fill, (d) smallest k.  Packing (k > 1) is only used for C < 128 so the class ids
    stay exact in bf16 for the MXU expansion.
    """
    if C >= 128:
        return 1
    best_k, best_score = 1, None
    for k in range(1, max(1, min(64, 1024 // C)) + 1):
        width = k * C
        fill = width / _round_up(width, 128)
        score = (B % k == 0, width % 128 == 0, fill, -k)
        if best_score is None or score > best_score:
            best_k, best_score = k, score
    return best_k


def _pick_tile(rows, kc, pred_bytes, tgt_bytes, block_rows=None):
    """Row-tile size: large enough to amortize the ~0.35us per-grid-step overhead,
    small enough that double-buffered inputs + in-kernel f32 temporaries stay inside
    a 24 MiB budget (under the explicit 32 MiB scoped-VMEM limit, safe on v5e/v6e/v7x)."""
    p_pad = _round_up(kc, 128)
    # pred (double-buffered) + lane-padded target block (double-buffered)
    # + ~20 B/lane of in-kernel temporaries (expected / weights / products in f32).
    per_row = 2 * p_pad * pred_bytes + 2 * 128 * tgt_bytes + 20 * p_pad
    cap = max(32, ((24 << 20) // per_row) // 32 * 32)
    if block_rows is not None:
        cap = min(cap, max(32, _round_up(block_rows, 32)))
    if rows <= cap:
        return rows, 1
    nb = _cdiv(rows, cap)
    tile = min(cap, _round_up(_cdiv(rows, nb), 32))
    nb = _cdiv(rows, tile)
    return tile, nb


def _loss_kernel(*refs, on_w, off_w, inv_b, rows, tile_r, use_dot):
    """Accumulates sum_{valid rows, lanes} w * pred into a resident (1,1) f32 output,
    where w = on_w on the target lane of each packed group and off_w elsewhere.
    The last grid step scales the accumulator by -1/B."""
    if use_dot:
        pred_ref, tgt_ref, lane_ref, expand_ref, out_ref = refs
    else:
        pred_ref, tgt_ref, lane_ref, out_ref = refs

    i = pl.program_id(0)
    nb = pl.num_programs(0)

    @pl.when(i == 0)
    def _init():
        out_ref[...] = jnp.zeros_like(out_ref)

    lane = lane_ref[...]  # (1, k*C) f32: class id of every lane (l % C)

    def tile_value(pred, tgt):
        if use_dot:
            # (R, k) bf16 class ids x (k, k*C) bf16 0/1 expansion -> (R, k*C) f32.
            # Exactly one 1 per lane column, f32 accumulation -> exact small ints.
            expected = jnp.dot(tgt, expand_ref[...],
                               preferred_element_type=jnp.float32)
        else:
            expected = tgt  # (R, 1) f32 class id, broadcast over lanes below.
        w = jnp.where(expected == lane, on_w, off_w)  # (R, k*C) f32
        # pred promotes bf16 -> f32 inside the product; accumulate in f32.
        return jnp.sum(w * pred)

    tail = rows - (nb - 1) * tile_r  # static Python int
    if tail == tile_r:
        out_ref[...] += tile_value(pred_ref[...], tgt_ref[...])
    else:
        @pl.when(i < nb - 1)
        def _full_blocks():
            out_ref[...] += tile_value(pred_ref[...], tgt_ref[...])

        @pl.when(i == nb - 1)
        def _ragged_tail():
            # Static prefix slice: rows beyond the array (unspecified DMA contents)
            # are never read, so no masking ops are needed on the hot path.
            out_ref[...] += tile_value(pred_ref[:tail, :], tgt_ref[:tail, :])

    @pl.when(i == nb - 1)
    def _finalize():
        out_ref[...] = out_ref[...] * (-inv_b)


def get_loss(pred, target, smooth=True, block_rows=None):
    """Pallas equivalent of model/pct_cls_ssg.py::get_loss.forward.

    pred   : (B, C) log-probabilities (f32 or bf16).
    target : (B,) integer class indices.
    """
    pred = jnp.asarray(pred)
    if pred.dtype not in (jnp.float32, jnp.bfloat16):
        pred = pred.astype(jnp.float32)
    target = jnp.asarray(target).reshape(-1)
    B, C = pred.shape

    eps = 0.2 if smooth else 0.0
    on_w = 1.0 - eps
    # TODO(synk): PyTorch divides by zero for n_class == 1; we clamp off_w to 0 instead.
    off_w = float(eps / (C - 1)) if C > 1 else 0.0

    k = _choose_k(B, C)            # always divides B -> metadata-only reshape below
    use_dot = k > 1
    rows = B // k
    kc = k * C

    pred_packed = pred.reshape(rows, kc)           # free (row-major dim merge)
    if use_dot:
        # Class ids < C <= 127 are exact in bf16 (MXU-friendly LHS, half the VMEM pad).
        tgt = target.astype(jnp.bfloat16).reshape(rows, k)
        tgt_bytes = 2
    else:
        tgt = target.astype(jnp.float32).reshape(rows, 1)
        tgt_bytes = 4

    tile_r, nb = _pick_tile(rows, kc, pred.dtype.itemsize, tgt_bytes, block_rows)

    # Tiny resident constants (fetched once: constant index_map -> no re-DMA).
    lane = jnp.asarray((np.arange(kc) % C).astype(np.float32).reshape(1, kc))
    inputs = [pred_packed, tgt, lane]
    in_specs = [
        pl.BlockSpec((tile_r, kc), lambda i: (i, 0)),
        pl.BlockSpec((tile_r, tgt.shape[1]), lambda i: (i, 0)),
        pl.BlockSpec((1, kc), lambda i: (0, 0)),
    ]
    if use_dot:
        expand_np = (np.arange(k)[:, None] == (np.arange(kc) // C)[None, :])
        expand = jnp.asarray(expand_np.astype(np.float32)).astype(jnp.bfloat16)
        inputs.append(expand)
        in_specs.append(pl.BlockSpec((k, kc), lambda i: (0, 0)))

    kernel = functools.partial(
        _loss_kernel,
        on_w=float(on_w), off_w=float(off_w), inv_b=float(1.0 / B),
        rows=rows, tile_r=tile_r, use_dot=use_dot)

    out = pl.pallas_call(
        kernel,
        out_shape=jax.ShapeDtypeStruct((1, 1), jnp.float32),
        grid_spec=pltpu.PrefetchScalarGridSpec(
            num_scalar_prefetch=0,
            grid=(nb,),
            in_specs=in_specs,
            out_specs=pl.BlockSpec((1, 1), lambda i: (0, 0)),
        ),
        compiler_params=pltpu.CompilerParams(
            dimension_semantics=("arbitrary",),
            vmem_limit_bytes=32 * 1024 * 1024,
        ),
        cost_estimate=pl.CostEstimate(
            flops=int(6 * B * C),
            transcendentals=0,
            bytes_accessed=int(pred.size * pred.dtype.itemsize
                               + target.size * 4 + 4),
        ),
    )(*inputs)
    return out[0, 0]


def _ref_loss(pred, target, smooth=True):
    pred = jnp.asarray(pred, jnp.float32)
    _, C = pred.shape
    one_hot = jax.nn.one_hot(target, C, dtype=jnp.float32)
    if smooth:
        eps = 0.2
        w = one_hot * (1 - eps) + (1 - one_hot) * (eps / (C - 1))
    else:
        w = one_hot
    return -(w * pred).sum(axis=1).mean()


if __name__ == "__main__":
    key = jax.random.PRNGKey(0)
    k1, k2, k3, k4, k5, k6 = jax.random.split(key, 6)

    # 1) Small ModelNet40-style case (B=8, C=40, f32): packed path, single block.
    B, C = 8, 40
    pred = jax.nn.log_softmax(jax.random.normal(k1, (B, C), jnp.float32), axis=1)
    target = jax.random.randint(k2, (B,), 0, C, dtype=jnp.int32)
    loss = get_loss(pred, target, smooth=True)
    loss_nll = get_loss(pred, target, smooth=False)
    jax.block_until_ready((loss, loss_nll))
    assert jnp.allclose(loss, _ref_loss(pred, target, True), atol=1e-5, rtol=1e-5)
    assert jnp.allclose(loss_nll, _ref_loss(pred, target, False), atol=1e-5, rtol=1e-5)

    # 2) bf16, lane packing k=8, forced multi-block grid with a ragged tail.
    B2, C2 = 1000, 16
    pred2 = jax.nn.log_softmax(jax.random.normal(k3, (B2, C2), jnp.float32),
                               axis=1).astype(jnp.bfloat16)
    target2 = jax.random.randint(k4, (B2,), 0, C2, dtype=jnp.int32)
    loss2 = get_loss(pred2, target2, smooth=True, block_rows=32)
    jax.block_until_ready(loss2)
    assert jnp.allclose(loss2, _ref_loss(pred2, target2, True), atol=5e-4, rtol=5e-4)

    # 3) Wide-class (C >= 128) unpacked path, single block.
    B3, C3 = 16, 256
    pred3 = jax.nn.log_softmax(jax.random.normal(k5, (B3, C3), jnp.float32), axis=1)
    target3 = jax.random.randint(k6, (B3,), 0, C3, dtype=jnp.int32)
    loss3 = get_loss(pred3, target3, smooth=True)
    jax.block_until_ready(loss3)
    assert jnp.allclose(loss3, _ref_loss(pred3, target3, True), atol=1e-5, rtol=1e-5)

    # 4) Unpacked path with multiple blocks and a ragged tail.
    B4, C4 = 300, 130
    pred4 = jax.nn.log_softmax(jax.random.normal(k1, (B4, C4), jnp.float32), axis=1)
    target4 = jax.random.randint(k2, (B4,), 0, C4, dtype=jnp.int32)
    loss4 = get_loss(pred4, target4, smooth=True, block_rows=64)
    jax.block_until_ready(loss4)
    assert jnp.allclose(loss4, _ref_loss(pred4, target4, True), atol=1e-5, rtol=1e-5)

    print("KERNEL_OK")
</pallas_src>

<mosaic_0001>
module attributes {stable_mosaic.version = 11 : i64} {
  func.func @_loss_kernel(%arg0: i32, %arg1: memref<1x320xf32, #tpu.memory_space<vmem>>, %arg2: memref<1x8xbf16, #tpu.memory_space<vmem>>, %arg3: memref<1x320xf32, #tpu.memory_space<vmem>>, %arg4: memref<8x320xbf16, #tpu.memory_space<vmem>>, %arg5: memref<1x1xf32, #tpu.memory_space<vmem>>) attributes {dimension_semantics = [#tpu.dimension_semantics<arbitrary>], iteration_bounds = array<i64: 1>, scalar_prefetch = 0 : i64, scratch_operands = 0 : i64, tpu.core_type = #tpu.core_type<tc>, window_params = [{transform_indices = @transform_0, window_bounds = array<i64: 1, 320>}, {transform_indices = @transform_1, window_bounds = array<i64: 1, 8>}, {pipeline_mode = #tpu.pipeline_mode<synchronous>, transform_indices = @transform_2, window_bounds = array<i64: 1, 320>}, {pipeline_mode = #tpu.pipeline_mode<synchronous>, transform_indices = @transform_3, window_bounds = array<i64: 8, 320>}, {pipeline_mode = #tpu.pipeline_mode<synchronous>, transform_indices = @transform_4, window_bounds = array<i64: 1, 1>}]} {
    %c0_i32 = arith.constant 0 : i32
    %0 = arith.cmpi eq, %arg0, %c0_i32 : i32
    %1 = arith.extui %0 : i1 to i32
    %c0_i32_0 = arith.constant 0 : i32
    %2 = arith.cmpi ne, %1, %c0_i32_0 : i32
    scf.if %2 {
      %cst_17 = arith.constant 0.000000e+00 : f32
      %24 = vector.broadcast %cst_17 : f32 to vector<1x1xf32>
      %c0_18 = arith.constant 0 : index
      %c0_19 = arith.constant 0 : index
      %25 = vector.load %arg5[%c0_18, %c0_19] : memref<1x1xf32, #tpu.memory_space<vmem>>, vector<1x1xf32>
      tpu.vector_store %arg5[%c0_18, %c0_19], %24 {strides = array<i32>} : memref<1x1xf32, #tpu.memory_space<vmem>>, vector<1x1xf32>,
    } else {
    }
    %c0 = arith.constant 0 : index
    %c0_1 = arith.constant 0 : index
    %3 = vector.load %arg3[%c0, %c0_1] : memref<1x320xf32, #tpu.memory_space<vmem>>, vector<1x320xf32>
    %c0_2 = arith.constant 0 : index
    %c0_3 = arith.constant 0 : index
    %4 = vector.load %arg5[%c0_2, %c0_3] : memref<1x1xf32, #tpu.memory_space<vmem>>, vector<1x1xf32>
    %c0_4 = arith.constant 0 : index
    %c0_5 = arith.constant 0 : index
    %5 = vector.load %arg1[%c0_4, %c0_5] : memref<1x320xf32, #tpu.memory_space<vmem>>, vector<1x320xf32>
    %c0_6 = arith.constant 0 : index
    %c0_7 = arith.constant 0 : index
    %6 = vector.load %arg2[%c0_6, %c0_7] : memref<1x8xbf16, #tpu.memory_space<vmem>>, vector<1x8xbf16>
    %c0_8 = arith.constant 0 : index
    %c0_9 = arith.constant 0 : index
    %7 = vector.load %arg4[%c0_8, %c0_9] : memref<8x320xbf16, #tpu.memory_space<vmem>>, vector<8x320xbf16>
    %cst = arith.constant dense<0.000000e+00> : vector<1x320xf32>
    %8 = tpu.matmul %6, %7, %cst {dimension_numbers = #tpu.dot_dimension_numbers<[1], [0], [0], [1], [0, 0, 1, 1], [], []>} : vector<1x8xbf16>, vector<8x320xbf16>, vector<1x320xf32> -> vector<1x320xf32>
    %9 = arith.cmpf oeq, %8, %3 : vector<1x320xf32>
    %cst_10 = arith.constant 8.000000e-01 : f32
    %cst_11 = arith.constant 0.00512820529 : f32
    %10 = vector.broadcast %cst_10 : f32 to vector<1x320xf32>
    %11 = vector.broadcast %cst_11 : f32 to vector<1x320xf32>
    %12 = arith.select %9, %10, %11 : vector<1x320xi1>, vector<1x320xf32>
    %13 = arith.mulf %12, %5 : vector<1x320xf32>
    %14 = vector.shape_cast %13 : vector<1x320xf32> to vector<1x1x320xf32>
    %cst_12 = arith.constant dense<0.000000e+00> : vector<1xf32>
    %15 = vector.multi_reduction <add>, %14, %cst_12 [1, 2] : vector<1x1x320xf32> to vector<1xf32>
    %16 = vector.shape_cast %15 : vector<1xf32> to vector<1x1x1xf32>
    %17 = vector.extract %16[0, 0, 0] : f32 from vector<1x1x1xf32>
    %18 = vector.broadcast %17 : f32 to vector<1x1xf32>
    %19 = arith.addf %4, %18 : vector<1x1xf32>
    %c0_13 = arith.constant 0 : index
    %c0_14 = arith.constant 0 : index
    %20 = vector.load %arg5[%c0_13, %c0_14] : memref<1x1xf32, #tpu.memory_space<vmem>>, vector<1x1xf32>
    tpu.vector_store %arg5[%c0_13, %c0_14], %19 {strides = array<i32>} : memref<1x1xf32, #tpu.memory_space<vmem>>, vector<1x1xf32>,
    %c0_i32_15 = arith.constant 0 : i32
    %21 = arith.cmpi eq, %arg0, %c0_i32_15 : i32
    %22 = arith.extui %21 : i1 to i32
    %c0_i32_16 = arith.constant 0 : i32
    %23 = arith.cmpi ne, %22, %c0_i32_16 : i32
    scf.if %23 {
      %c0_17 = arith.constant 0 : index
      %c0_18 = arith.constant 0 : index
      %24 = vector.load %arg5[%c0_17, %c0_18] : memref<1x1xf32, #tpu.memory_space<vmem>>, vector<1x1xf32>
      %cst_19 = arith.constant -1.250000e-01 : f32
      %25 = vector.broadcast %cst_19 : f32 to vector<1x1xf32>
      %26 = arith.mulf %24, %25 : vector<1x1xf32>
      %c0_20 = arith.constant 0 : index
      %c0_21 = arith.constant 0 : index
      %27 = vector.load %arg5[%c0_20, %c0_21] : memref<1x1xf32, #tpu.memory_space<vmem>>, vector<1x1xf32>
      tpu.vector_store %arg5[%c0_20, %c0_21], %26 {strides = array<i32>} : memref<1x1xf32, #tpu.memory_space<vmem>>, vector<1x1xf32>,
    } else {
    }
    return
  }
  func.func @transform_0(%arg0: i32) -> (i32, i32) {
    %c0_i32 = arith.constant 0 : i32
    %c0_i32_0 = arith.constant 0 : i32
    return %arg0, %c0_i32 : i32, i32
  }
  func.func @transform_1(%arg0: i32) -> (i32, i32) {
    %c0_i32 = arith.constant 0 : i32
    %c0_i32_0 = arith.constant 0 : i32
    return %arg0, %c0_i32 : i32, i32
  }
  func.func @transform_2(%arg0: i32) -> (i32, i32) {
    %c0_i32 = arith.constant 0 : i32
    %c0_i32_0 = arith.constant 0 : i32
    %c0_i32_1 = arith.constant 0 : i32
    return %c0_i32, %c0_i32_0 : i32, i32
  }
  func.func @transform_3(%arg0: i32) -> (i32, i32) {
    %c0_i32 = arith.constant 0 : i32
    %c0_i32_0 = arith.constant 0 : i32
    %c0_i32_1 = arith.constant 0 : i32
    return %c0_i32, %c0_i32_0 : i32, i32
  }
  func.func @transform_4(%arg0: i32) -> (i32, i32) {
    %c0_i32 = arith.constant 0 : i32
    %c0_i32_0 = arith.constant 0 : i32
    %c0_i32_1 = arith.constant 0 : i32
    return %c0_i32, %c0_i32_0 : i32, i32
  }
}

</mosaic_0001>

<bundles_post_ra>
// kernel: tpu_custom_call.1
= control target key start
LH: loop header
LB: loop body
LE: loop exit
PB: predicated region body
PF: predicated region fallthrough
CT: control target
= control target key end

     0   :  { %9 = vsyncpa [#allocation3], 0  ;;  %s415_s0 = inlined_call_operand.hbm [shape: f32[1,320], index: 0, kind: input, shape index: {}]   ;;  %s416_s1 = inlined_call_operand.vmem [shape: bf16[1,8], index: 1, kind: input, shape index: {}]   ;;  %s417_s2 = inlined_call_operand.vmem [shape: f32[1,320], index: 2, kind: input, shape index: {}]   ;;  %s418_s3 = inlined_call_operand.hbm [shape: bf16[8,320], index: 3, kind: input, shape index: {}]   ;;  %s419_s4 = inlined_call_operand.hbm [shape: f32[1,1], index: 4, kind: output, shape index: {}]  }
   0x1   :  { %10 = vsyncpa [#allocation6], 0 }
   0x2   :  { %11 = vsyncpa [#allocation4], 0  ;;  %s338_s15 = smov [#allocation2]   ;;  %s339_s17 = smov [#allocation5]  }
   0x3   :  { %s18_s16 = sshll.u32 %s338_s15, 4  ;;  %s32_s18 = sshll.u32 %s339_s17, 4  ;;  %s19_s16 = int_to_ptr.vmem [resolvable:$true] %s18_s16  ;;  %s33_s18 = int_to_ptr.vmem [resolvable:$true] %s32_s18 }
   0x4   :  { %s266_s21 = scalar_lea.hbm %s415_s0, 48 }
   0x5   :  { %p267_p0 = scmp.ne.s32.totalorder %s415_s0, %s266_s21  ;;  %p270_p1 = scmp.lt.u32.totalorder %s266_s21, %s415_s0 }
   0x7   :  { %p272_p2 = pnand %p270_p1, %p267_p0 }
   0x9   :  { %275 = shalt.err (!%p272_p2)
}
   0xa   :  { %s276_s26 = scalar_lea.vmem %s19_s16, 48  ;;  %s280_s27 = scalar_lea.vmem %s19_s16, 64 }
   0xb   :  { %p277_p3 = scmp.ne.s32.totalorder %s19_s16, %s276_s26  ;;  %p281_p4 = scmp.lt.s32.totalorder %s19_s16, %s19_s16 }
   0xc   :  { %p282_p5 = scmp.lt.s32.totalorder %s280_s27, %s276_s26 }
   0xe   :  { %p283_p6 = por %p282_p5, %p281_p4 }
  0x10   :  { %p284_p7 = pnand %p283_p6, %p277_p3 }
  0x12   :  { %287 = shalt.err (!%p284_p7)
}
  0x13   :  { %21 = dma.hbm_to_vmem [thread:$0]  %s415_s0, 48, %s19_s16, [#allocation3]  }
  0x14   :  { %s288_s6 = scalar_lea.hbm %s418_s3, 192 }
  0x15   :  { %p289_p8 = scmp.ne.s32.totalorder %s418_s3, %s288_s6  ;;  %p292_p9 = scmp.lt.u32.totalorder %s288_s6, %s418_s3 }
  0x17   :  { %p294_p10 = pnand %p292_p9, %p289_p8 }
  0x19   :  { %297 = shalt.err (!%p294_p10)
}
  0x1a   :  { %s298_s11 = scalar_lea.vmem %s33_s18, 192  ;;  %p303_p12 = scmp.lt.s32.totalorder %s33_s18, %s33_s18 }
  0x1b   :  { %p299_p11 = scmp.ne.s32.totalorder %s33_s18, %s298_s11  ;;  %p304_p13 = scmp.lt.s32.totalorder %s298_s11, %s298_s11 }
  0x1d   :  { %p305_p0 = por %p304_p13, %p303_p12 }
  0x1f   :  { %p306_p1 = pnand %p305_p0, %p299_p11 }
  0x21   :  { %309 = shalt.err (!%p306_p1)
}
  0x22   :  { %35 = dma.hbm_to_vmem [thread:$0]  %s418_s3, 192, %s33_s18, [#allocation6]  }
  0x23   :  { %332 = dma.done.wait [#allocation3], 48  }
  0x24   :  { %333 = vsyncadd [#allocation3], 4294967248 }
  0x25   :  { %334 = dma.done.wait [#allocation6], 192  }
  0x26   :  { %335 = vsyncadd [#allocation6], 4294967104  ;;  %vm47_vm0 = vcmask 0   ;;  %v340_v0 = vmov 0.0   ;;  %v341_v1 = vmov 0   ;;  %vm342_vm1 = vmmov 0  }
  0x27   :  { %48 = vst.msk [vmem:[#allocation7] sm:$0x1] %vm47_vm0, %v340_v0  ;;  %249 = vmatprep.subr.bf16.mxu1 %v340_v0  ;;  %109 = vmatprep.mubr.bf16.mxu0 %v341_v1  ;;  %vm67_vm2 = vcmask 1043456   ;;  %v53_v2 = vld [vmem:[#allocation5] sm:$0xff]  ;;  %v265_v3 = vld [vmem:[#allocation5 + $0x8] ss:$0 sps:$4 sm:$0xff]   ;;  %v159_v9 = vlaneseq }
  0x28   :  { %251 = vmatprep.mubr.msk.bf16.mxu1 %vm342_vm1, %v340_v0  ;;  %v242_v4 = vcombine.high %v53_v2, %v53_v2  ;;  %v241_v5 = vcombine.low %v53_v2, %v53_v2  ;;  %v75_v6 = vsel %vm67_vm2, %v265_v3, 0  ;;  %v52_v8 = vld [vmem:[%s416_s1] sm:$0x1]  ;;  %vm63_vm3 = vcmask 64512  }
  0x29   :  { %250 = vmatpush3.bf16.msra.mxu1 %v75_v6  ;;  %v160_v10 = vshrl.u32 %v159_v9, 7  ;;  %v49_v13 = vld [vmem:[%s417_s2] sm:$0x7]  ;;  %v343_v25 = vmov 0.0051282053   ;;  %vm199_vm7 = vcmask 1040384  }
  0x2a   :  { %244 = vmatprep.subr.msk.bf16.mxu0 %vm67_vm2, %v242_v4  ;;  %v69_v7 = vsel %vm67_vm2, %v241_v5, 0  ;;  %v51_v15 = vld [vmem:[#allocation2] sm:$0x7]  ;;  %vm203_vm8 = vcmask 516096   ;;  %s344_s2 = smov [#allocation7]  }
  0x2b   :  { %78 = vmatpush1.bf16.msra.mxu0 %v69_v7  ;;  %v169_v11 = vsub.s32 2, %v160_v10  ;;  %v161_v12 = vsub.s32 0, %v160_v10  ;;  %v165_v14 = vsub.s32 1, %v160_v10  ;;  %s231_s16 = sshll.u32 %s344_s2, 4  ;;  %s232_s16 = int_to_ptr.vmem [resolvable:$true] %s231_s16 }
  0x2c   :  { %252 = vmatmul.mubr.msk.bf16.vlgmr.msra.gmra.mrb[0].mxu1 %vm63_vm3, %v52_v8  ;;  %s310_s17 = scalar_lea.vmem %s232_s16, 16  ;;  %s314_s18 = scalar_lea.vmem %s232_s16, 32 }
  0x2d   :  { %v170_v16 = vrot.slane %v49_v13, %v169_v11  ;;  %v162_v17 = vrot.slane %v49_v13, %v161_v12  ;;  %v192_v18 = vrot.slane %v51_v15, %v169_v11  ;;  %v166_v19 = vrot.slane %v49_v13, %v165_v14  ;;  %p311_p2 = scmp.ne.s32.totalorder %s232_s16, %s310_s17  ;;  %p315_p3 = scmp.lt.s32.totalorder %s232_s16, %s232_s16 }
  0x2e   :  { %245 = vmatmul.mubr.msk.bf16.vlgmr.msra.gmra.mrb[0].mxu0 %vm63_vm3, %v52_v8  ;;  %v184_v20 = vrot.slane %v51_v15, %v161_v12  ;;  %v188_v23 = vrot.slane %v51_v15, %v165_v14  ;;  %v50_v49 = vld [vmem:[#allocation7] sm:$0x1]  ;;  %p316_p4 = scmp.lt.s32.totalorder %s314_s18, %s310_s17 }
  0x30   :  { %p317_p5 = por %p316_p4, %p315_p3 }
  0x32   :  { %p318_p6 = pnand %p317_p5, %p311_p2 }
  0xff   :  { %v152_v21 = vpop.f32.mrb[0].mxu1 }
 0x100   :  { %vm176_vm4 = vcmp.eq.f32.partialorder %v152_v21, %v170_v16  ;;  %v253_v24 = vpop.f32.mrb[1].mxu1 }
 0x101   :  { %v111_v22 = vpop.f32.mrb[0].mxu0  ;;  %v179_v26 = vsel %vm176_vm4, 0.8, %v343_v25  ;;  %v155_v28 = vpop.f32.mrb[2].mxu1 }
 0x102   :  { %vm174_vm5 = vcmp.eq.f32.partialorder %v111_v22, %v162_v17  ;;  %v113_v27 = vpop.f32.mrb[1].mxu0  ;;  %v198_v30 = vmul.f32 %v192_v18, %v179_v26  ;;  %v254_v32 = vpop.f32.mrb[3].mxu1 }
 0x103   :  { %v177_v29 = vsel %vm174_vm5, 0.8, %v343_v25  ;;  %vm175_vm6 = vcmp.eq.f32.partialorder %v113_v27, %v166_v19  ;;  %v115_v31 = vpop.f32.mrb[2].mxu0 }
 0x104   :  { %v196_v33 = vmul.f32 %v184_v20, %v177_v29  ;;  %v178_v34 = vsel %vm175_vm6, 0.8, %v343_v25  ;;  %v116_v35 = vpop.f32.mrb[3].mxu0  ;;  %v204_v39 = vsel %vm203_vm8, %v198_v30, 0.0 }
 0x105   :  { %v197_v36 = vmul.f32 %v188_v23, %v178_v34 }
 0x106   :  { %v200_v37 = vsel %vm199_vm7, %v196_v33, 0.0 }
 0x107   :  { %v201_v38 = vsel %vm199_vm7, %v197_v36, 0.0 }
 0x108   :  { %v202_v40 = vadd.f32 %v201_v38, %v200_v37 }
 0x10a   :  { %v205_v41 = vadd.f32 %v204_v39, %v202_v40 }
 0x10c   :  { %206 = vadd.xlane.f32.xlu0 %v205_v41 }
 0x199   :  { %v207_v42 = vpop.xlane.xlu0 %206 }
 0x19a   :  { %v208_v43 = vrot.slane %v207_v42, 4 }
 0x19c   :  { %v209_v44 = vadd.f32 %v208_v43, %v207_v42 }
 0x19e   :  { %v210_v45 = vrot.slane %v209_v44, 2 }
 0x1a0   :  { %v211_v46 = vadd.f32 %v210_v45, %v209_v44 }
 0x1a2   :  { %v212_v47 = vrot.slane %v211_v46, 1 }
 0x1a4   :  { %v213_v48 = vadd.f32 %v212_v47, %v211_v46 }
 0x1a6   :  { %255 = vpush %v213_v48 }
 0x1d7   :  { %s256_s1 = spop %255 }
 0x1d8   :  { %v215_v50 = vstv %s256_s1 }
 0x1d9   :  { %v216_v51 = vadd.f32 %v215_v50, %v50_v49 }
 0x1db   :  { %218 = vst.msk [vmem:[#allocation7] sm:$0x1] %vm47_vm0, %v216_v51 }
 0x1e2   :  { %v222_v52 = vld [vmem:[#allocation7] sm:$0x1] }
 0x1e3   :  { %v223_v53 = vmul.f32 -0.125, %v222_v52 }
 0x1e5   :  { %224 = vst.msk [vmem:[#allocation7] sm:$0x1] %vm47_vm0, %v223_v53 }
 0x1e6   :  { %321 = shalt.err (!%p318_p6)
}
 0x1e7   :  { %s322_s21 = scalar_lea.hbm %s419_s4, 16 }
 0x1e8   :  { %p323_p7 = scmp.ne.s32.totalorder %s419_s4, %s322_s21  ;;  %p326_p8 = scmp.lt.u32.totalorder %s322_s21, %s419_s4 }
 0x1ea   :  { %p328_p9 = pnand %p326_p8, %p323_p7 }
 0x1ec   :  { %331 = shalt.err (!%p328_p9)
}
 0x1ed   :  { %234 = dma.vmem_to_hbm [thread:$0]  %s232_s16, 16, %s419_s4, [#allocation4]  }
 0x1ee   :  { %336 = dma.done.wait [#allocation4], 16  }
 0x1ef   :  { %337 = vsyncadd [#allocation4], 4294967280 }
 0x1f0   :  { %238 = vsyncpa [#allocation3], 1 }
 0x1f1   :  { %239 = vsyncpa [#allocation6], 1 }
 0x1f2   :  { %240 = vsyncpa [#allocation4], 1 }

</bundles_post_ra>
